<compile_context>
chip_gen: v7x
topology: tpu7x:2x2x1
jax: 0.10.0
libtpu: 0.0.40
codegen_flags: <defaults>
</compile_context>

<pallas_src>
import jax
import jax.numpy as jnp
from jax.experimental import pallas as pl
from jax.experimental.pallas import tpu as pltpu

_LANE = 1024        # lane-dense slab width (multiple of 128)
_TILE_ROWS = 256    # (2, 256, 1024) f32 block = 2 MiB per buffer


def _zrelu_kernel(x_ref, o_ref):
    # Block shape (2, tile_rows, _LANE): plane 0 = real, plane 1 = imag.
    re = x_ref[0]
    im = x_ref[1]
    mask = jnp.logical_and(re > 0.0, im > 0.0)
    o_ref[0] = jnp.where(mask, re, 0.0)
    o_ref[1] = jnp.where(mask, im, 0.0)


def zrelu(z):
    """zReLU(z) = z if Re[z] > 0 and Im[z] > 0 else 0 (elementwise, any shape)."""
    orig_shape = z.shape
    total = z.size

    # Single stacked float32 slab: (2, total). Plane stacking is a contiguous
    # concat (no interleave shuffle) and fuses with the real/imag extraction.
    re = jnp.real(z).astype(jnp.float32).reshape(-1)
    im = jnp.imag(z).astype(jnp.float32).reshape(-1)
    planes = jnp.stack([re, im], axis=0)

    rows = pl.cdiv(total, _LANE)
    if rows >= _TILE_ROWS:
        tile_rows = _TILE_ROWS
        rows = pl.cdiv(rows, _TILE_ROWS) * _TILE_ROWS   # uniform tiling, bounded VMEM
    else:
        tile_rows = rows                                # single full-extent block

    padded_total = rows * _LANE
    pad = padded_total - total
    if pad:
        planes = jnp.pad(planes, ((0, 0), (0, pad)))    # skipped when divisible
    planes = planes.reshape(2, rows, _LANE)

    grid = (rows // tile_rows,)
    block = (2, tile_rows, _LANE)

    out = pl.pallas_call(
        _zrelu_kernel,
        out_shape=jax.ShapeDtypeStruct((2, rows, _LANE), jnp.float32),
        grid_spec=pltpu.PrefetchScalarGridSpec(
            num_scalar_prefetch=0,
            grid=grid,
            in_specs=[pl.BlockSpec(block, lambda i: (0, i, 0))],
            out_specs=pl.BlockSpec(block, lambda i: (0, i, 0)),
        ),
        compiler_params=pltpu.CompilerParams(
            dimension_semantics=("parallel",),
        ),
    )(planes)

    out = out.reshape(2, padded_total)
    if pad:
        out = out[:, :total]
    out_re = out[0].reshape(orig_shape)
    out_im = out[1].reshape(orig_shape)
    return jax.lax.complex(out_re, out_im).astype(z.dtype)


if __name__ == "__main__":
    key = jax.random.PRNGKey(0)
    k1, k2, k3, k4 = jax.random.split(key, 4)

    # NCHW complex activation, like a PyTorch conv output.
    shape = (2, 4, 16, 16)
    z = jax.lax.complex(
        jax.random.normal(k1, shape, dtype=jnp.float32),
        jax.random.normal(k2, shape, dtype=jnp.float32),
    )
    out = jax.block_until_ready(zrelu(z))
    mask = (jnp.real(z) > 0) & (jnp.imag(z) > 0)
    ref = z * mask.astype(z.dtype)
    assert out.shape == z.shape and out.dtype == z.dtype
    assert jnp.allclose(out, ref), "mismatch vs reference (aligned shape)"

    # Awkward shape to exercise the padding path.
    shape2 = (3, 5, 7, 11)
    z2 = jax.lax.complex(
        jax.random.normal(k3, shape2, dtype=jnp.float32),
        jax.random.normal(k4, shape2, dtype=jnp.float32),
    )
    out2 = jax.block_until_ready(zrelu(z2))
    mask2 = (jnp.real(z2) > 0) & (jnp.imag(z2) > 0)
    ref2 = z2 * mask2.astype(z2.dtype)
    assert out2.shape == z2.shape and out2.dtype == z2.dtype
    assert jnp.allclose(out2, ref2), "mismatch vs reference (padded shape)"

    print("KERNEL_OK")
</pallas_src>

<mosaic_0001>
module attributes {stable_mosaic.version = 11 : i64} {
  func.func @_zrelu_kernel(%arg0: i32, %arg1: memref<2x2x1024xf32, #tpu.memory_space<vmem>>, %arg2: memref<2x2x1024xf32, #tpu.memory_space<vmem>>) attributes {dimension_semantics = [#tpu.dimension_semantics<parallel>], iteration_bounds = array<i64: 1>, scalar_prefetch = 0 : i64, scratch_operands = 0 : i64, tpu.core_type = #tpu.core_type<tc>, window_params = [{transform_indices = @transform_0, window_bounds = array<i64: 2, 2, 1024>}, {transform_indices = @transform_1, window_bounds = array<i64: 2, 2, 1024>}]} {
    %c0 = arith.constant 0 : index
    %c0_0 = arith.constant 0 : index
    %c0_1 = arith.constant 0 : index
    %0 = vector.load %arg1[%c0, %c0_0, %c0_1] : memref<2x2x1024xf32, #tpu.memory_space<vmem>>, vector<1x2x1024xf32>
    %1 = vector.shape_cast %0 : vector<1x2x1024xf32> to vector<2x1024xf32>
    %c1 = arith.constant 1 : index
    %c0_2 = arith.constant 0 : index
    %c0_3 = arith.constant 0 : index
    %2 = vector.load %arg1[%c1, %c0_2, %c0_3] : memref<2x2x1024xf32, #tpu.memory_space<vmem>>, vector<1x2x1024xf32>
    %3 = vector.shape_cast %2 : vector<1x2x1024xf32> to vector<2x1024xf32>
    %cst = arith.constant 0.000000e+00 : f32
    %4 = vector.broadcast %cst : f32 to vector<2x1024xf32>
    %5 = arith.cmpf ogt, %1, %4 : vector<2x1024xf32>
    %cst_4 = arith.constant 0.000000e+00 : f32
    %6 = vector.broadcast %cst_4 : f32 to vector<2x1024xf32>
    %7 = arith.cmpf ogt, %3, %6 : vector<2x1024xf32>
    %8 = arith.andi %5, %7 : vector<2x1024xi1>
    %cst_5 = arith.constant 0.000000e+00 : f32
    %9 = vector.broadcast %cst_5 : f32 to vector<2x1024xf32>
    %10 = arith.select %8, %1, %9 : vector<2x1024xi1>, vector<2x1024xf32>
    %c0_6 = arith.constant 0 : index
    %c0_7 = arith.constant 0 : index
    %c0_8 = arith.constant 0 : index
    %11 = vector.load %arg2[%c0_6, %c0_7, %c0_8] : memref<2x2x1024xf32, #tpu.memory_space<vmem>>, vector<1x2x1024xf32>
    %12 = vector.shape_cast %11 : vector<1x2x1024xf32> to vector<2x1024xf32>
    %13 = vector.shape_cast %10 : vector<2x1024xf32> to vector<1x2x1024xf32>
    tpu.vector_store %arg2[%c0_6, %c0_7, %c0_8], %13 {strides = array<i32>} : memref<2x2x1024xf32, #tpu.memory_space<vmem>>, vector<1x2x1024xf32>,
    %cst_9 = arith.constant 0.000000e+00 : f32
    %14 = vector.broadcast %cst_9 : f32 to vector<2x1024xf32>
    %15 = arith.select %8, %3, %14 : vector<2x1024xi1>, vector<2x1024xf32>
    %c1_10 = arith.constant 1 : index
    %c0_11 = arith.constant 0 : index
    %c0_12 = arith.constant 0 : index
    %16 = vector.load %arg2[%c1_10, %c0_11, %c0_12] : memref<2x2x1024xf32, #tpu.memory_space<vmem>>, vector<1x2x1024xf32>
    %17 = vector.shape_cast %16 : vector<1x2x1024xf32> to vector<2x1024xf32>
    %18 = vector.shape_cast %15 : vector<2x1024xf32> to vector<1x2x1024xf32>
    tpu.vector_store %arg2[%c1_10, %c0_11, %c0_12], %18 {strides = array<i32>} : memref<2x2x1024xf32, #tpu.memory_space<vmem>>, vector<1x2x1024xf32>,
    return
  }
  func.func @transform_0(%arg0: i32) -> (i32, i32, i32) {
    %c0_i32 = arith.constant 0 : i32
    %c0_i32_0 = arith.constant 0 : i32
    %c0_i32_1 = arith.constant 0 : i32
    return %c0_i32, %arg0, %c0_i32_0 : i32, i32, i32
  }
  func.func @transform_1(%arg0: i32) -> (i32, i32, i32) {
    %c0_i32 = arith.constant 0 : i32
    %c0_i32_0 = arith.constant 0 : i32
    %c0_i32_1 = arith.constant 0 : i32
    return %c0_i32, %arg0, %c0_i32_0 : i32, i32, i32
  }
}

</mosaic_0001>

<bundles_post_ra>
// kernel: tpu_custom_call.1
= control target key start
LH: loop header
LB: loop body
LE: loop exit
PB: predicated region body
PF: predicated region fallthrough
CT: control target
= control target key end

     0   :  { %6 = vsyncpa [#allocation3], 0  ;;  %s156_s0 = inlined_call_operand.hbm [shape: f32[2,2,1024], index: 0, kind: input, shape index: {}]   ;;  %s157_s1 = inlined_call_operand.hbm [shape: f32[2,2,1024], index: 1, kind: output, shape index: {}]  }
   0x1   :  { %7 = vsyncpa [#allocation4], 0  ;;  %s112_s6 = smov [#allocation2]   ;;  %s64_s10 = scalar_lea.hbm %s156_s0, 512 }
   0x2   :  { %s13_s7 = sshll.u32 %s112_s6, 4  ;;  %p65_p0 = scmp.ne.s32.totalorder %s156_s0, %s64_s10  ;;  %s14_s7 = int_to_ptr.vmem [resolvable:$true] %s13_s7 }
   0x3   :  { %p68_p1 = scmp.lt.u32.totalorder %s64_s10, %s156_s0 }
   0x5   :  { %p70_p2 = pnand %p68_p1, %p65_p0 }
   0x7   :  { %73 = shalt.err (!%p70_p2)
}
   0x8   :  { %s74_s15 = scalar_lea.vmem %s14_s7, 512  ;;  %p79_p4 = scmp.lt.s32.totalorder %s14_s7, %s14_s7 }
   0x9   :  { %p75_p3 = scmp.ne.s32.totalorder %s14_s7, %s74_s15  ;;  %p80_p5 = scmp.lt.s32.totalorder %s74_s15, %s74_s15 }
   0xb   :  { %p81_p6 = por %p80_p5, %p79_p4 }
   0xd   :  { %p82_p7 = pnand %p81_p6, %p75_p3 }
   0xf   :  { %85 = shalt.err (!%p82_p7)
}
  0x10   :  { %s113_s16 = smov 256   ;;  %s114_s17 = smov 16  }
  0x11   :  { %19 = dma.hbm_to_vmem [thread:$0]  %s156_s0, 512, %s14_s7, [#allocation3], %s113_s16, %s113_s16, %s114_s17  }
  0x12   :  { %108 = dma.done.wait [#allocation3], 512  }
  0x13   :  { %109 = vsyncadd [#allocation3], 4294966784  ;;  %v23_v0 = vld [vmem:[#allocation2] sm:$0xff]  ;;  %v26_v1 = vld [vmem:[#allocation2 + $0x10] sm:$0xff]  ;;  %s115_s20 = smov [#allocation5]  }
  0x14   :  { %v24_v2 = vld [vmem:[#allocation2 + $0x8] sm:$0xff]  ;;  %s48_s21 = sshll.u32 %s115_s20, 4  ;;  %vm28_vm0 = vcmp.gt.f32.partialorder %v23_v0, 0.0  ;;  %vm30_vm1 = vcmp.gt.f32.partialorder %v26_v1, 0.0  ;;  %v27_v3 = vld [vmem:[#allocation2 + $0x18] sm:$0xff]  ;;  %s49_s21 = int_to_ptr.vmem [resolvable:$true] %s48_s21 }
  0x15   :  { %vm29_vm2 = vcmp.gt.f32.partialorder %v24_v2, 0.0  ;;  %vm32_vm3 = vmand %vm28_vm0, %vm30_vm1  ;;  %vm31_vm4 = vcmp.gt.f32.partialorder %v27_v3, 0.0  ;;  %s86_s0 = scalar_lea.vmem %s49_s21, 512  ;;  %p91_p9 = scmp.lt.s32.totalorder %s49_s21, %s49_s21 }
  0x16   :  { %v34_v4 = vsel %vm32_vm3, %v23_v0, 0.0  ;;  %vm33_vm5 = vmand %vm29_vm2, %vm31_vm4  ;;  %v38_v5 = vsel %vm32_vm3, %v26_v1, 0.0  ;;  %p87_p8 = scmp.ne.s32.totalorder %s49_s21, %s86_s0  ;;  %p92_p10 = scmp.lt.s32.totalorder %s86_s0, %s86_s0 }
  0x17   :  { %36 = vst [vmem:[#allocation5] sm:$0xff] %v34_v4  ;;  %v35_v6 = vsel %vm33_vm5, %v24_v2, 0.0  ;;  %41 = vst [vmem:[#allocation5 + $0x10] sm:$0xff] %v38_v5  ;;  %v39_v7 = vsel %vm33_vm5, %v27_v3, 0.0 }
  0x18   :  { %37 = vst [vmem:[#allocation5 + $0x8] sm:$0xff] %v35_v6  ;;  %42 = vst [vmem:[#allocation5 + $0x18] sm:$0xff] %v39_v7  ;;  %p93_p11 = por %p92_p10, %p91_p9 }
  0x1a   :  { %p94_p12 = pnand %p93_p11, %p87_p8 }
  0x1c   :  { %97 = shalt.err (!%p94_p12)
}
  0x1d   :  { %s98_s24 = scalar_lea.hbm %s157_s1, 512 }
  0x1e   :  { %p99_p13 = scmp.ne.s32.totalorder %s157_s1, %s98_s24  ;;  %p102_p0 = scmp.lt.u32.totalorder %s98_s24, %s157_s1 }
  0x20   :  { %p104_p1 = pnand %p102_p0, %p99_p13 }
  0x22   :  { %107 = shalt.err (!%p104_p1)
}
  0x23   :  { %54 = dma.vmem_to_hbm [thread:$0]  %s49_s21, 512, %s157_s1, [#allocation4], %s113_s16, %s113_s16, %s114_s17  }
  0x24   :  { %110 = dma.done.wait [#allocation4], 512  }
  0x25   :  { %111 = vsyncadd [#allocation4], 4294966784 }
  0x26   :  { %58 = vsyncpa [#allocation3], 1 }
  0x27   :  { %59 = vsyncpa [#allocation4], 1 }

</bundles_post_ra>
